<compile_context>
chip_gen: v7x
topology: tpu7x:2x2x1
jax: 0.10.0
libtpu: 0.0.40
codegen_flags: <defaults>
</compile_context>

<pallas_src>
import jax
import jax.numpy as jnp
from jax.experimental import pallas as pl
from jax.experimental.pallas import tpu as pltpu


def encoder_gru_kernel(toks_ref, gi_hbm, h0_ref, whh_ref, bhh_ref,
                       out_ref,
                       gibuf, h_scr, sem):
    """toks: SMEM (T,) int32; gi_hbm: HBM (V, 3H) precomputed x@W_ih^T+b_ih.
    h0: VMEM (1, H); whh: VMEM (H, 3H) = W_hh^T; bhh: VMEM (1, 3H).
    out: VMEM (T, H).
    Scratch: gibuf (2, 1, 3H) double-buffered gathered row, h_scr (1, H), sem (2,)."""
    T, H = out_ref.shape

    def fetch(t, slot):
        # Gather one precomputed input-projection row HBM -> VMEM (O(3H) bytes).
        pltpu.make_async_copy(
            gi_hbm.at[pl.ds(toks_ref[t], 1), :], gibuf.at[slot], sem.at[slot]
        ).start()

    # Prime the pipeline with the first token's row.
    fetch(0, 0)
    # Hidden state lives in VMEM scratch for the whole sequence.
    h_scr[...] = h0_ref[...]

    @pl.loop(0, T)
    def _(t):
        slot = t & 1
        # Wait for this step's gathered row (shape-matched descriptor).
        pltpu.make_async_copy(
            gi_hbm.at[pl.ds(0, 1), :], gibuf.at[slot], sem.at[slot]
        ).wait()

        # Prefetch next step's row into the other slot (overlaps compute below).
        @pl.when(t + 1 < T)
        def _():
            fetch(t + 1, 1 - slot)

        gi = gibuf[slot]        # (1, 3H)  = x @ W_ih^T + b_ih   (precomputed)
        h = h_scr[...]          # (1, H)

        # Single fused recurrent matmul (weights resident in VMEM, f32 acc).
        gh = jnp.dot(h, whh_ref[...],
                     preferred_element_type=jnp.float32) + bhh_ref[...]  # (1, 3H)

        # Gate slices are 128-lane aligned (H multiple of 128) -> no relayout.
        r = jax.nn.sigmoid(gi[:, 0:H] + gh[:, 0:H])
        z = jax.nn.sigmoid(gi[:, H:2 * H] + gh[:, H:2 * H])
        n = jnp.tanh(gi[:, 2 * H:3 * H] + r * gh[:, 2 * H:3 * H])
        h_new = (1.0 - z) * n + z * h          # (1, H)

        h_scr[...] = h_new
        out_ref[pl.ds(t, 1), :] = h_new


def encoder_rnn_sequence(tokens, hidden, prepared):
    """Fused multi-step encode. tokens: int32 (T,); hidden: f32 (1, 1, H).
    Returns (outputs (T, 1, H), final hidden (1, 1, H))."""
    gi_table = prepared["gi_table"]            # (V, 3H)
    whh_t = prepared["whh_t"]                  # (H, 3H)
    bhh = prepared["bhh"]                      # (1, 3H)
    H = whh_t.shape[0]
    T = tokens.shape[0]
    h0 = hidden.reshape(1, H)

    vmem = pl.BlockSpec(memory_space=pltpu.MemorySpace.VMEM)
    smem = pl.BlockSpec(memory_space=pltpu.MemorySpace.SMEM)
    anyspace = pl.BlockSpec(memory_space=pl.ANY)   # keep the big table in HBM

    outputs = pl.pallas_call(
        encoder_gru_kernel,
        out_shape=jax.ShapeDtypeStruct((T, H), jnp.float32),
        in_specs=[smem, anyspace, vmem, vmem, vmem],
        out_specs=vmem,
        scratch_shapes=[
            pltpu.VMEM((2, 1, 3 * H), jnp.float32),   # double-buffered gi row
            pltpu.VMEM((1, H), jnp.float32),          # carried hidden state
            pltpu.SemaphoreType.DMA((2,)),
        ],
    )(tokens.astype(jnp.int32), gi_table, h0, whh_t, bhh)

    out = outputs.reshape(T, 1, H)
    h_final = outputs[T - 1].reshape(1, 1, H)
    return out, h_final


def encoder_rnn_forward(tok, hidden, prepared):
    """Single EncoderRNN.forward step (module semantics): tok int32 (1,),
    hidden (1, 1, H) -> (output (1, 1, H), hidden (1, 1, H))."""
    out, h = encoder_rnn_sequence(tok, hidden, prepared)
    return out, h


def prepare_params(params):
    """Done ONCE (hoisted out of the per-step path):
      * fold the embedding lookup + input projection into a (V, 3H) table,
      * pre-transpose the recurrent weight so the kernel does h @ W_hh^T."""
    emb = params["embedding"]                                  # (V, H)
    H = emb.shape[1]
    gi_table = emb @ params["w_ih"].T + params["b_ih"]         # (V, 3H)
    whh_t = params["w_hh"].T                                   # (H, 3H)
    bhh = params["b_hh"].reshape(1, 3 * H)
    return {"gi_table": gi_table, "whh_t": whh_t, "bhh": bhh}


def reference_sequence(tokens, hidden, params):
    """Pure-JAX reference: repeated PyTorch EncoderRNN.forward steps."""
    H = hidden.shape[-1]
    h = hidden.reshape(1, H)
    outs = []
    for t in range(tokens.shape[0]):
        x = params["embedding"][tokens[t]].reshape(1, H)
        gi = x @ params["w_ih"].T + params["b_ih"]
        gh = h @ params["w_hh"].T + params["b_hh"]
        r = jax.nn.sigmoid(gi[:, 0:H] + gh[:, 0:H])
        z = jax.nn.sigmoid(gi[:, H:2 * H] + gh[:, H:2 * H])
        n = jnp.tanh(gi[:, 2 * H:] + r * gh[:, 2 * H:])
        h = (1.0 - z) * n + z * h
        outs.append(h)
    return jnp.stack(outs, axis=0), h.reshape(1, 1, H)


def init_params(key, hidden_size, input_size):
    ks = jax.random.split(key, 5)
    s = 0.1
    return {
        "embedding": s * jax.random.normal(ks[0], (input_size, hidden_size), jnp.float32),
        "w_ih": s * jax.random.normal(ks[1], (3 * hidden_size, hidden_size), jnp.float32),
        "w_hh": s * jax.random.normal(ks[2], (3 * hidden_size, hidden_size), jnp.float32),
        "b_ih": s * jax.random.normal(ks[3], (3 * hidden_size,), jnp.float32),
        "b_hh": s * jax.random.normal(ks[4], (3 * hidden_size,), jnp.float32),
    }


if __name__ == "__main__":
    hidden_size = 256    # matches the module spec; lane-aligned (2 x 128)
    input_size = 512     # vocab, multiple of 128
    seq_len = 8

    key = jax.random.PRNGKey(0)
    pkey, hkey, tkey = jax.random.split(key, 3)

    params = init_params(pkey, hidden_size, input_size)
    prepared = prepare_params(params)                      # hoisted, done once
    hidden0 = jax.random.normal(hkey, (1, 1, hidden_size), jnp.float32)
    tokens = jax.random.randint(tkey, (seq_len,), 0, input_size, jnp.int32)

    # Fused multi-step encode: one pallas_call for the whole sequence.
    out_seq, h_seq = encoder_rnn_sequence(tokens, hidden0, prepared)
    out_seq = jax.block_until_ready(out_seq)
    h_seq = jax.block_until_ready(h_seq)

    ref_out, ref_h = reference_sequence(tokens, hidden0, params)
    assert out_seq.shape == (seq_len, 1, hidden_size)
    assert h_seq.shape == (1, 1, hidden_size)
    assert jnp.allclose(out_seq, ref_out, rtol=1e-4, atol=1e-4)
    assert jnp.allclose(h_seq, ref_h, rtol=1e-4, atol=1e-4)

    # Single-step call matching the PyTorch forward(input, hidden) signature.
    out1, h1 = encoder_rnn_forward(tokens[:1], hidden0, prepared)
    out1 = jax.block_until_ready(out1)
    ref_out1, ref_h1 = reference_sequence(tokens[:1], hidden0, params)
    assert out1.shape == (1, 1, hidden_size) and h1.shape == (1, 1, hidden_size)
    assert jnp.allclose(out1, ref_out1, rtol=1e-4, atol=1e-4)
    assert jnp.allclose(h1, ref_h1, rtol=1e-4, atol=1e-4)

    print("KERNEL_OK")
</pallas_src>

<mosaic_0001>
module attributes {stable_mosaic.version = 11 : i64} {
  func.func @encoder_gru_kernel(%arg0: memref<8xi32, #tpu.memory_space<smem>>, %arg1: memref<512x768xf32, #tpu.memory_space<any>>, %arg2: memref<1x256xf32, #tpu.memory_space<vmem>>, %arg3: memref<256x768xf32, #tpu.memory_space<vmem>>, %arg4: memref<1x768xf32, #tpu.memory_space<vmem>>, %arg5: memref<8x256xf32, #tpu.memory_space<vmem>>, %arg6: memref<2x1x768xf32, #tpu.memory_space<vmem>>, %arg7: memref<1x256xf32, #tpu.memory_space<vmem>>, %arg8: memref<2x!tpu.dma_semaphore, #tpu.memory_space<semaphore_mem>>) attributes {dimension_semantics = [], scalar_prefetch = 0 : i64, scratch_operands = 3 : i64, tpu.core_type = #tpu.core_type<tc>} {
    %c0 = arith.constant 0 : index
    %0 = memref.load %arg0[%c0] : memref<8xi32, #tpu.memory_space<smem>>
    %c0_i32 = arith.constant 0 : i32
    %c0_i32_0 = arith.constant 0 : i32
    %c0_i32_1 = arith.constant 0 : i32
    %1 = tpu.memref_slice %arg1[%0, %c0_i32_1] : memref<512x768xf32, #tpu.memory_space<any>> -> memref<1x768xf32, #tpu.memory_space<any>>
    %c0_i32_2 = arith.constant 0 : i32
    %c0_i32_3 = arith.constant 0 : i32
    %2 = tpu.memref_slice %arg6[%c0_i32, %c0_i32_2, %c0_i32_3] : memref<2x1x768xf32, #tpu.memory_space<vmem>> -> memref<1x1x768xf32, #tpu.memory_space<vmem>>
    %3 = tpu.memref_squeeze %2 : memref<1x1x768xf32, #tpu.memory_space<vmem>> -> memref<1x768xf32, #tpu.memory_space<vmem>>
    %4 = tpu.memref_slice %arg8[%c0_i32_0] : memref<2x!tpu.dma_semaphore, #tpu.memory_space<semaphore_mem>> -> memref<1x!tpu.dma_semaphore, #tpu.memory_space<semaphore_mem>>
    %5 = tpu.memref_squeeze %4 : memref<1x!tpu.dma_semaphore, #tpu.memory_space<semaphore_mem>> -> memref<!tpu.dma_semaphore, #tpu.memory_space<semaphore_mem>>
    tpu.enqueue_dma source(%1 : memref<1x768xf32, #tpu.memory_space<any>>) target(%3 : memref<1x768xf32, #tpu.memory_space<vmem>>) target_semaphore(%5 : memref<!tpu.dma_semaphore, #tpu.memory_space<semaphore_mem>>)
    %c0_4 = arith.constant 0 : index
    %c0_5 = arith.constant 0 : index
    %6 = vector.load %arg2[%c0_4, %c0_5] : memref<1x256xf32, #tpu.memory_space<vmem>>, vector<1x256xf32>
    %c0_6 = arith.constant 0 : index
    %c0_7 = arith.constant 0 : index
    %7 = vector.load %arg7[%c0_6, %c0_7] : memref<1x256xf32, #tpu.memory_space<vmem>>, vector<1x256xf32>
    tpu.vector_store %arg7[%c0_6, %c0_7], %6 {strides = array<i32>} : memref<1x256xf32, #tpu.memory_space<vmem>>, vector<1x256xf32>,
    %c0_i32_8 = arith.constant 0 : i32
    %c8_i32 = arith.constant 8 : i32
    %8 = arith.addi %c0_i32_8, %c8_i32 : i32
    %c1_i32 = arith.constant 1 : i32
    scf.for %arg9 = %c0_i32_8 to %8 step %c1_i32  : i32 {
      %c1_i32_10 = arith.constant 1 : i32
      %9 = arith.muli %arg9, %c1_i32_10 : i32
      %c0_i32_11 = arith.constant 0 : i32
      %10 = arith.addi %c0_i32_11, %9 : i32
      %c1_i32_12 = arith.constant 1 : i32
      %11 = arith.andi %10, %c1_i32_12 : i32
      %c0_i32_13 = arith.constant 0 : i32
      %c0_i32_14 = arith.constant 0 : i32
      %12 = tpu.memref_slice %arg1[%c0_i32_13, %c0_i32_14] : memref<512x768xf32, #tpu.memory_space<any>> -> memref<1x768xf32, #tpu.memory_space<any>>
      %c0_i32_15 = arith.constant 0 : i32
      %c0_i32_16 = arith.constant 0 : i32
      %13 = tpu.memref_slice %arg6[%11, %c0_i32_15, %c0_i32_16] : memref<2x1x768xf32, #tpu.memory_space<vmem>> -> memref<1x1x768xf32, #tpu.memory_space<vmem>>
      %14 = tpu.memref_squeeze %13 : memref<1x1x768xf32, #tpu.memory_space<vmem>> -> memref<1x768xf32, #tpu.memory_space<vmem>>
      %15 = tpu.memref_slice %arg8[%11] : memref<2x!tpu.dma_semaphore, #tpu.memory_space<semaphore_mem>> -> memref<1x!tpu.dma_semaphore, #tpu.memory_space<semaphore_mem>>
      %16 = tpu.memref_squeeze %15 : memref<1x!tpu.dma_semaphore, #tpu.memory_space<semaphore_mem>> -> memref<!tpu.dma_semaphore, #tpu.memory_space<semaphore_mem>>
      tpu.wait_dma2 semaphore(%16 : memref<!tpu.dma_semaphore, #tpu.memory_space<semaphore_mem>>) src(%12 : memref<1x768xf32, #tpu.memory_space<any>>) dst(%14 : memref<1x768xf32, #tpu.memory_space<vmem>>)
      %c1_i32_17 = arith.constant 1 : i32
      %17 = arith.addi %10, %c1_i32_17 : i32
      %c8_i32_18 = arith.constant 8 : i32
      %18 = arith.cmpi slt, %17, %c8_i32_18 : i32
      %19 = arith.extui %18 : i1 to i32
      %c0_i32_19 = arith.constant 0 : i32
      %20 = arith.cmpi ne, %19, %c0_i32_19 : i32
      scf.if %20 {
        %c1_i32_34 = arith.constant 1 : i32
        %58 = arith.addi %10, %c1_i32_34 : i32
        %c1_i32_35 = arith.constant 1 : i32
        %59 = arith.subi %c1_i32_35, %11 : i32
        %60 = arith.index_cast %58 : i32 to index
        %61 = memref.load %arg0[%60] : memref<8xi32, #tpu.memory_space<smem>>
        %c0_i32_36 = arith.constant 0 : i32
        %62 = tpu.memref_slice %arg1[%61, %c0_i32_36] : memref<512x768xf32, #tpu.memory_space<any>> -> memref<1x768xf32, #tpu.memory_space<any>>
        %c0_i32_37 = arith.constant 0 : i32
        %c0_i32_38 = arith.constant 0 : i32
        %63 = tpu.memref_slice %arg6[%59, %c0_i32_37, %c0_i32_38] : memref<2x1x768xf32, #tpu.memory_space<vmem>> -> memref<1x1x768xf32, #tpu.memory_space<vmem>>
        %64 = tpu.memref_squeeze %63 : memref<1x1x768xf32, #tpu.memory_space<vmem>> -> memref<1x768xf32, #tpu.memory_space<vmem>>
        %65 = tpu.memref_slice %arg8[%59] : memref<2x!tpu.dma_semaphore, #tpu.memory_space<semaphore_mem>> -> memref<1x!tpu.dma_semaphore, #tpu.memory_space<semaphore_mem>>
        %66 = tpu.memref_squeeze %65 : memref<1x!tpu.dma_semaphore, #tpu.memory_space<semaphore_mem>> -> memref<!tpu.dma_semaphore, #tpu.memory_space<semaphore_mem>>
        tpu.enqueue_dma source(%62 : memref<1x768xf32, #tpu.memory_space<any>>) target(%64 : memref<1x768xf32, #tpu.memory_space<vmem>>) target_semaphore(%66 : memref<!tpu.dma_semaphore, #tpu.memory_space<semaphore_mem>>)
      } else {
      }
      %21 = arith.index_cast %11 : i32 to index
      %c0_20 = arith.constant 0 : index
      %c0_21 = arith.constant 0 : index
      %22 = vector.load %arg6[%21, %c0_20, %c0_21] : memref<2x1x768xf32, #tpu.memory_space<vmem>>, vector<1x1x768xf32>
      %23 = vector.shape_cast %22 : vector<1x1x768xf32> to vector<1x768xf32>
      %c0_22 = arith.constant 0 : index
      %c0_23 = arith.constant 0 : index
      %24 = vector.load %arg7[%c0_22, %c0_23] : memref<1x256xf32, #tpu.memory_space<vmem>>, vector<1x256xf32>
      %c0_24 = arith.constant 0 : index
      %c0_25 = arith.constant 0 : index
      %25 = vector.load %arg3[%c0_24, %c0_25] : memref<256x768xf32, #tpu.memory_space<vmem>>, vector<256x768xf32>
      %cst = arith.constant dense<0.000000e+00> : vector<1x768xf32>
      %26 = tpu.matmul %24, %25, %cst {dimension_numbers = #tpu.dot_dimension_numbers<[1], [0], [0], [1], [0, 0, 1, 1], [], []>} : vector<1x256xf32>, vector<256x768xf32>, vector<1x768xf32> -> vector<1x768xf32>
      %c0_26 = arith.constant 0 : index
      %c0_27 = arith.constant 0 : index
      %27 = vector.load %arg4[%c0_26, %c0_27] : memref<1x768xf32, #tpu.memory_space<vmem>>, vector<1x768xf32>
      %28 = arith.addf %26, %27 : vector<1x768xf32>
      %29 = vector.extract_strided_slice %23 {offsets = [0, 0], sizes = [1, 256], strides = [1, 1]} : vector<1x768xf32> to vector<1x256xf32>
      %30 = vector.extract_strided_slice %28 {offsets = [0, 0], sizes = [1, 256], strides = [1, 1]} : vector<1x768xf32> to vector<1x256xf32>
      %31 = arith.addf %29, %30 : vector<1x256xf32>
      %32 = arith.negf %31 : vector<1x256xf32>
      %33 = math.exp %32 : vector<1x256xf32>
      %cst_28 = arith.constant 1.000000e+00 : f32
      %34 = vector.broadcast %cst_28 : f32 to vector<1x256xf32>
      %35 = arith.addf %34, %33 : vector<1x256xf32>
      %36 = arith.divf %34, %35 : vector<1x256xf32>
      %37 = vector.extract_strided_slice %23 {offsets = [0, 256], sizes = [1, 256], strides = [1, 1]} : vector<1x768xf32> to vector<1x256xf32>
      %38 = vector.extract_strided_slice %28 {offsets = [0, 256], sizes = [1, 256], strides = [1, 1]} : vector<1x768xf32> to vector<1x256xf32>
      %39 = arith.addf %37, %38 : vector<1x256xf32>
      %40 = arith.negf %39 : vector<1x256xf32>
      %41 = math.exp %40 : vector<1x256xf32>
      %cst_29 = arith.constant 1.000000e+00 : f32
      %42 = vector.broadcast %cst_29 : f32 to vector<1x256xf32>
      %43 = arith.addf %42, %41 : vector<1x256xf32>
      %44 = arith.divf %42, %43 : vector<1x256xf32>
      %45 = vector.extract_strided_slice %23 {offsets = [0, 512], sizes = [1, 256], strides = [1, 1]} : vector<1x768xf32> to vector<1x256xf32>
      %46 = vector.extract_strided_slice %28 {offsets = [0, 512], sizes = [1, 256], strides = [1, 1]} : vector<1x768xf32> to vector<1x256xf32>
      %47 = arith.mulf %36, %46 : vector<1x256xf32>
      %48 = arith.addf %45, %47 : vector<1x256xf32>
      %49 = math.tanh %48 : vector<1x256xf32>
      %cst_30 = arith.constant 1.000000e+00 : f32
      %50 = vector.broadcast %cst_30 : f32 to vector<1x256xf32>
      %51 = arith.subf %50, %44 : vector<1x256xf32>
      %52 = arith.mulf %51, %49 : vector<1x256xf32>
      %53 = arith.mulf %44, %24 : vector<1x256xf32>
      %54 = arith.addf %52, %53 : vector<1x256xf32>
      %c0_31 = arith.constant 0 : index
      %c0_32 = arith.constant 0 : index
      %55 = vector.load %arg7[%c0_31, %c0_32] : memref<1x256xf32, #tpu.memory_space<vmem>>, vector<1x256xf32>
      tpu.vector_store %arg7[%c0_31, %c0_32], %54 {strides = array<i32>} : memref<1x256xf32, #tpu.memory_space<vmem>>, vector<1x256xf32>,
      %56 = arith.index_cast %10 : i32 to index
      %c0_33 = arith.constant 0 : index
      %57 = vector.load %arg5[%56, %c0_33] : memref<8x256xf32, #tpu.memory_space<vmem>>, vector<1x256xf32>
      tpu.vector_store %arg5[%56, %c0_33], %54 {strides = array<i32>} : memref<8x256xf32, #tpu.memory_space<vmem>>, vector<1x256xf32>,
    }
    %c8_i32_9 = arith.constant 8 : i32
    return
  }
}

</mosaic_0001>

<bundles_post_ra>
// kernel: tpu_custom_call.1
= control target key start
LH: loop header
LB: loop body
LE: loop exit
PB: predicated region body
PF: predicated region fallthrough
CT: control target
= control target key end

     0   :  { %10 = vsyncpa [#allocation8], 0  ;;  %s1355_s0 = inlined_call_operand.hbm [shape: s32[8], index: 0, kind: input, shape index: {}]   ;;  %s1356_s1 = inlined_call_operand.hbm [shape: f32[512,768], index: 1, kind: input, shape index: {}]   ;;  %s1357_s2 = inlined_call_operand.hbm [shape: f32[1,256], index: 2, kind: input, shape index: {}]   ;;  %s1358_s3 = inlined_call_operand.hbm [shape: f32[256,768], index: 3, kind: input, shape index: {}]   ;;  %s1359_s4 = inlined_call_operand.hbm [shape: f32[1,768], index: 4, kind: input, shape index: {}]   ;;  %s1360_s5 = inlined_call_operand.hbm [shape: f32[8,256], index: 5, kind: output, shape index: {}]  }
   0x1   :  { %11 = vsyncpa [#allocation6], 0 }
   0x2   :  { %12 = vsyncpa [#allocation11], 0 }
   0x3   :  { %13 = vsyncpa [#allocation7], 0  ;;  %s1120_s18 = smov [#allocation10]   ;;  %s952_s22 = scalar_lea.hbm %s1358_s3, 24576 }
   0x4   :  { %s37_s19 = sshll.u32 %s1120_s18, 4  ;;  %p953_p0 = scmp.ne.s32.totalorder %s1358_s3, %s952_s22  ;;  %s38_s19 = int_to_ptr.vmem [resolvable:$true] %s37_s19 }
   0x5   :  { %p956_p1 = scmp.lt.u32.totalorder %s952_s22, %s1358_s3 }
   0x7   :  { %p958_p2 = pnand %p956_p1, %p953_p0 }
   0x9   :  { %961 = shalt.err (!%p958_p2)
}
   0xa   :  { %s962_s27 = scalar_lea.vmem %s38_s19, 24576  ;;  %p967_p4 = scmp.lt.s32.totalorder %s38_s19, %s38_s19 }
   0xb   :  { %p963_p3 = scmp.ne.s32.totalorder %s38_s19, %s962_s27  ;;  %p968_p5 = scmp.lt.s32.totalorder %s962_s27, %s962_s27 }
   0xd   :  { %p969_p6 = por %p968_p5, %p967_p4 }
   0xf   :  { %p970_p7 = pnand %p969_p6, %p963_p3 }
  0x11   :  { %973 = shalt.err (!%p970_p7)
}
  0x12   :  { %s1121_s28 = smov 768   ;;  %s1122_s29 = smov 48  }
  0x13   :  { %43 = dma.hbm_to_vmem [thread:$0]  %s1358_s3, 24576, %s38_s19, [#allocation11], %s1121_s28, %s1121_s28, %s1122_s29  }
  0x14   :  { %s974_s9 = scalar_lea.hbm %s1355_s0, 16 }
  0x15   :  { %p975_p8 = scmp.ne.s32.totalorder %s1355_s0, %s974_s9  ;;  %p978_p9 = scmp.lt.u32.totalorder %s974_s9, %s1355_s0 }
  0x17   :  { %p980_p10 = pnand %p978_p9, %p975_p8 }
  0x19   :  { %983 = shalt.err (!%p980_p10)
}
  0x1a   :  { %s1123_s14 = smov [#allocation5]   ;;  %s1124_s3 = smov [#allocation9]  }
  0x1b   :  { %21 = dma.hbm_to_smem %s1355_s0, 16, %s1123_s14, [#allocation8]  }
  0x1c   :  { %s28_s17 = sshll.u32 %s1124_s3, 4  ;;  %s1125_s18 = smov [#allocation12]   ;;  %s29_s17 = int_to_ptr.vmem [resolvable:$true] %s28_s17 }
  0x1d   :  { %s50_s19 = sshll.u32 %s1125_s18, 4  ;;  %s984_s22 = scalar_lea.hbm %s1357_s2, 32  ;;  %s51_s19 = int_to_ptr.vmem [resolvable:$true] %s50_s19 }
  0x1e   :  { %p985_p11 = scmp.ne.s32.totalorder %s1357_s2, %s984_s22  ;;  %p988_p12 = scmp.lt.u32.totalorder %s984_s22, %s1357_s2 }
  0x20   :  { %p990_p13 = pnand %p988_p12, %p985_p11 }
  0x22   :  { %993 = shalt.err (!%p990_p13)
}
  0x23   :  { %s994_s0 = scalar_lea.vmem %s29_s17, 32  ;;  %p999_p1 = scmp.lt.s32.totalorder %s29_s17, %s29_s17 }
  0x24   :  { %p995_p0 = scmp.ne.s32.totalorder %s29_s17, %s994_s0  ;;  %p1000_p2 = scmp.lt.s32.totalorder %s994_s0, %s994_s0 }
  0x26   :  { %p1001_p3 = por %p1000_p2, %p999_p1 }
  0x28   :  { %p1002_p4 = pnand %p1001_p3, %p995_p0 }
  0x2a   :  { %1005 = shalt.err (!%p1002_p4)
}
  0x2b   :  { %31 = dma.hbm_to_vmem [thread:$0]  %s1357_s2, 32, %s29_s17, [#allocation6]  }
  0x2c   :  { %s1006_s6 = scalar_lea.hbm %s1359_s4, 96 }
  0x2d   :  { %p1007_p5 = scmp.ne.s32.totalorder %s1359_s4, %s1006_s6  ;;  %p1010_p6 = scmp.lt.u32.totalorder %s1006_s6, %s1359_s4 }
  0x2f   :  { %p1012_p7 = pnand %p1010_p6, %p1007_p5 }
  0x31   :  { %1015 = shalt.err (!%p1012_p7)
}
  0x32   :  { %s1016_s11 = scalar_lea.vmem %s51_s19, 96  ;;  %p1021_p9 = scmp.lt.s32.totalorder %s51_s19, %s51_s19 }
  0x33   :  { %p1017_p8 = scmp.ne.s32.totalorder %s51_s19, %s1016_s11  ;;  %p1022_p10 = scmp.lt.s32.totalorder %s1016_s11, %s1016_s11 }
  0x35   :  { %p1023_p11 = por %p1022_p10, %p1021_p9 }
  0x37   :  { %p1024_p12 = pnand %p1023_p11, %p1017_p8 }
  0x39   :  { %1027 = shalt.err (!%p1024_p12)
}
  0x3a   :  { %53 = dma.hbm_to_vmem [thread:$0]  %s1359_s4, 96, %s51_s19, [#allocation11]  }
  0x3b   :  { %1106 = dma.done.wait [#allocation8], 16  }
  0x3c   :  { %1107 = vsyncadd [#allocation8], 4294967280 }
  0x3d   :  { %1108 = dma.done.wait [#allocation6], 32  }
  0x3e   :  { %1109 = vsyncadd [#allocation6], 4294967264 }
  0x3f   :  { %1110 = dma.done.wait [#allocation11], 24672  }
  0x40   :  { %1111 = vsyncadd [#allocation11], 4294942624 }
  0x41   :  { %66 = sfence }
  0x42   :  { %s67_s13 = sld [smem:[#allocation5]]  ;;  %v79_v0 = vld [vmem:[#allocation9] sm:$0x3]  ;;  %v80_v1 = vlaneseq  ;;  %s1126_s14 = smov [#allocation2]  }
  0x43   :  { %s75_s4 = sshll.u32 %s1126_s14, 4  ;;  %s1030_s25 = scalar_lea.hbm %s1356_s1, 49152  ;;  %s1220_s4 = int_to_ptr.vmem [resolvable:$true] %s75_s4 }
  0x44   :  { %vm1214_vm0 = vcmp.lt.s32.totalorder %v80_v1, 256 }
  0x45   :  { %84 = vst.msk [vmem:[#allocation3] sm:$0x3] %vm1214_vm0, %v79_v0 }
  0x48   :  { %s68_s15 = sshrl.u32 %s67_s13, 3  ;;  %s69_s16 = sand.u32 7, %s67_s13  }
  0x49   :  { %s70_s3 = smul.u32 48, %s68_s15 }
  0x4b   :  { %s71_s17 = sadd.s32 %s70_s3, %s69_s16 }
  0x4c   :  { %s712_s18 = sshll.u32 %s71_s17, 4 }
  0x4d   :  { %s73_s21 = scalar_lea.hbm %s1356_s1, %s712_s18 }
  0x4e   :  { %s1028_s22 = scalar_lea.hbm %s73_s21, 96  ;;  %p1031_p0 = scmp.lt.u32.totalorder %s73_s21, %s1356_s1 }
  0x4f   :  { %p1029_p13 = scmp.ne.s32.totalorder %s73_s21, %s1028_s22  ;;  %p1032_p1 = scmp.lt.u32.totalorder %s1030_s25, %s1028_s22 }
  0x50   :  { %p1034_p3 = scmp.lt.u32.totalorder %s1028_s22, %s73_s21 }
  0x51   :  { %p1033_p2 = por %p1032_p1, %p1031_p0 }
  0x53   :  { %p1035_p4 = por %p1034_p3, %p1033_p2 }
  0x55   :  { %p1036_p5 = pnand %p1035_p4, %p1029_p13 }
  0x57   :  { %1039 = shalt.err (!%p1036_p5)  }
  0x58   :  { %s1040_s29 = scalar_lea.vmem %s1220_s4, 96  ;;  %s1044_s30 = scalar_lea.vmem %s1220_s4, 192 }
  0x59   :  { %p1041_p6 = scmp.ne.s32.totalorder %s1220_s4, %s1040_s29  ;;  %p1045_p7 = scmp.lt.s32.totalorder %s1220_s4, %s1220_s4 }
  0x5a   :  { %p1046_p8 = scmp.lt.s32.totalorder %s1044_s30, %s1040_s29 }
  0x5c   :  { %p1047_p9 = por %p1046_p8, %p1045_p7 }
  0x5e   :  { %p1048_p10 = pnand %p1047_p9, %p1041_p6 }
  0x60   :  { %1051 = shalt.err (!%p1048_p10)  }
  0x61   :  { %s1127_s6 = smov 128   ;;  %s1128_s7 = smov 16  }
  0x62   :  { %s1129_s8 = smov 1   ;;  %s1243_s9 = smov 0  }
  0x63   :  { %78 = dma.hbm_to_vmem [thread:$0]  %s73_s21, 96, %s1220_s4, [#allocation4], %s1127_s6, %s1128_s7, %s1129_s8 }
  0x64 LB: > { %s1249_s10 = sand.u32 1, %s1118_s9  ;;  %s1118_s9 = sphi %s1243_s9, %s1363_s9  }
  0x65   : > { %s92_s11 = smul.u32 6, %s1249_s10  ;;  %s94_s12 = scalar_lea.sflag [#allocation4], %s1249_s10 }
  0x67   : > { %s1252_s2 = scalar_lea.vmem [#allocation2], %s92_s11 }
  0x68   : > { %1112 = dma.done.wait %s94_s12, 96 }
  0x69   : > { %1113 = vsyncadd %s94_s12, 4294967200  ;;  %v122_v3 = vld [vmem:[#allocation10 + $0x8] sm:$0xff]  ;;  %v128_v4 = vld [vmem:[#allocation10 + $0x38] sm:$0xff]  ;;  %v1256_v48 = vshrl.u32 %v80_v1, 7  ;;  %s1279_s13 = sadd.s32 1, %s1118_s9   ;;  %s103_s3 = ssub.s32 1, %s1249_s10 }
  0x6a   : > { %v121_v5 = vld [vmem:[#allocation10] sm:$0xff]  ;;  %v722_v6 = vpack.c.bf16 %v128_v4, %v122_v3  ;;  %v127_v7 = vld [vmem:[#allocation10 + $0x30] sm:$0xff]  ;;  %v134_v8 = vld [vmem:[#allocation10 + $0x68] sm:$0xff]  ;;  %p918_p11 = scmp.lt.s32.totalorder %s1279_s13, 8  ;;  %s111_s18 = smul.u32 6, %s103_s3 }
  0x6b   : > { %v140_v9 = vld [vmem:[#allocation10 + $0x98] sm:$0xff]  ;;  %v724_v10 = vpack.c.bf16 %v127_v7, %v121_v5  ;;  %v133_v12 = vld [vmem:[#allocation10 + $0x60] sm:$0xff]  ;;  %v139_v13 = vld [vmem:[#allocation10 + $0x90] sm:$0xff]  ;;  %v321_v0 = vsub.s32 1, %v1256_v48  ;;  %s113_s28 = scalar_lea.sflag [#allocation4], %s103_s3 }
  0x6c   : > { %v726_v11 = vpack.c.bf16 %v140_v9, %v134_v8  ;;  %v146_v14 = vld [vmem:[#allocation10 + $0xc8] sm:$0xff]  ;;  %723 = vmatprep.subr.bf16.mxu0 %v722_v6  ;;  %v152_v15 = vld [vmem:[#allocation10 + $0xf8] sm:$0xff]  ;;  %v728_v16 = vpack.c.bf16 %v139_v13, %v133_v12  ;;  %v145_v18 = vld [vmem:[#allocation10 + $0xc0] sm:$0xff]  ;;  %s915_s14 = scalar_select %p918_p11, [#allocation5], [#allocation16] }
  0x6d   : > { %725 = vmatpush1.bf16.msra.mxu0 %v724_v10  ;;  %v730_v17 = vpack.c.bf16 %v152_v15, %v146_v14  ;;  %v151_v19 = vld [vmem:[#allocation10 + $0xf0] sm:$0xff]  ;;  %v158_v20 = vld [vmem:[#allocation10 + $0x128] sm:$0xff]  ;;  %v164_v21 = vld [vmem:[#allocation10 + $0x158] sm:$0xff]  ;;  %s916_s15 = scalar_select %p918_p11, %s1279_s13, 0 }
  0x6e   : > { %727 = vmatprep.subr.bf16.mxu0 %v726_v11  ;;  %v732_v22 = vpack.c.bf16 %v151_v19, %v145_v18  ;;  %v734_v23 = vpack.c.bf16 %v164_v21, %v158_v20  ;;  %v157_v24 = vld [vmem:[#allocation10 + $0x120] sm:$0xff]  ;;  %v163_v25 = vld [vmem:[#allocation10 + $0x150] sm:$0xff]  ;;  %v170_v26 = vld [vmem:[#allocation10 + $0x188] sm:$0xff]  ;;  %s112_s22 = scalar_lea.vmem [#allocation2], %s111_s18 }
  0x6f   : > { %v176_v27 = vld [vmem:[#allocation10 + $0x1b8] sm:$0xff]  ;;  %v736_v28 = vpack.c.bf16 %v163_v25, %v157_v24  ;;  %v169_v30 = vld [vmem:[#allocation10 + $0x180] sm:$0xff]  ;;  %v175_v31 = vld [vmem:[#allocation10 + $0x1b0] sm:$0xff]  ;;  %s104_s16 = sld [smem:[%s915_s14 + %s916_s15]]  ;;  %s115_s23 = sshll.u32 %s112_s22, 4  ;;  %s1293_s23 = int_to_ptr.vmem [resolvable:$true] %s115_s23 }
  0x70   : > { %v738_v29 = vpack.c.bf16 %v176_v27, %v170_v26  ;;  %v182_v32 = vld [vmem:[#allocation10 + $0x1e8] sm:$0xff]  ;;  %v188_v33 = vld [vmem:[#allocation10 + $0x218] sm:$0xff]  ;;  %v740_v34 = vpack.c.bf16 %v175_v31, %v169_v30  ;;  %v181_v35 = vld [vmem:[#allocation10 + $0x1e0] sm:$0xff] }
  0x71   : > { %729 = vmatpush1.bf16.msra.mxu0 %v728_v16  ;;  %v124_v36 = vld [vmem:[#allocation10 + $0x18] sm:$0xff]  ;;  %v742_v37 = vpack.c.bf16 %v188_v33, %v182_v32  ;;  %v187_v38 = vld [vmem:[#allocation10 + $0x210] sm:$0xff]  ;;  %v194_v39 = vld [vmem:[#allocation10 + $0x248] sm:$0xff] }
  0x72   : > { %731 = vmatprep.subr.bf16.mxu0 %v730_v17  ;;  %v130_v40 = vld [vmem:[#allocation10 + $0x48] sm:$0xff]  ;;  %v200_v41 = vld [vmem:[#allocation10 + $0x278] sm:$0xff]  ;;  %v123_v43 = vld [vmem:[#allocation10 + $0x10] sm:$0xff]  ;;  %v744_v49 = vpack.c.bf16 %v187_v38, %v181_v35 }
  0x73   : > { %v786_v42 = vpack.c.bf16 %v130_v40, %v124_v36  ;;  %v129_v44 = vld [vmem:[#allocation10 + $0x40] sm:$0xff]  ;;  %v136_v46 = vld [vmem:[#allocation10 + $0x78] sm:$0xff]  ;;  %v142_v47 = vld [vmem:[#allocation10 + $0xa8] sm:$0xff]  ;;  %v746_v53 = vpack.c.bf16 %v200_v41, %v194_v39 }
  0x74   : > { %v788_v45 = vpack.c.bf16 %v129_v44, %v123_v43  ;;  %v193_v50 = vld [vmem:[#allocation10 + $0x240] sm:$0xff]  ;;  %v790_v51 = vpack.c.bf16 %v142_v47, %v136_v46  ;;  %v135_v52 = vld [vmem:[#allocation10 + $0x70] sm:$0xff]  ;;  %v206_v55 = vld [vmem:[#allocation10 + $0x2a8] sm:$0xff] }
  0x75   : > { %733 = vmatpush1.bf16.msra.mxu0 %v732_v22  ;;  %787 = vmatprep.subr.bf16.mxu1 %v786_v42  ;;  %v199_v54 = vld [vmem:[#allocation10 + $0x270] sm:$0xff]  ;;  %v141_v56 = vld [vmem:[#allocation10 + $0xa0] sm:$0xff]  ;;  %v212_v57 = vld [vmem:[#allocation10 + $0x2d8] sm:$0xff]  ;;  %s105_s17 = sshrl.u32 %s104_s16, 3  ;;  %s106_s19 = sand.u32 7, %s104_s16  }
  0x76   : > { %735 = vmatprep.subr.bf16.mxu0 %v734_v23  ;;  %789 = vmatpush1.bf16.msra.mxu1 %v788_v45  ;;  %v792_v58 = vpack.c.bf16 %v141_v56, %v135_v52  ;;  %v148_v59 = vld [vmem:[#allocation10 + $0xd8] sm:$0xff]  ;;  %v154_v60 = vld [vmem:[#allocation10 + $0x108] sm:$0xff]  ;;  %v147_v62 = vld [vmem:[#allocation10 + $0xd0] sm:$0xff]  ;;  %v748_v3 = vpack.c.bf16 %v199_v54, %v193_v50  ;;  %v750_v7 = vpack.c.bf16 %v212_v57, %v206_v55  ;;  %s107_s20 = smul.u32 48, %s105_s17 }
  0x77   : > { %791 = vmatprep.subr.bf16.mxu1 %v790_v51  ;;  %v794_v61 = vpack.c.bf16 %v154_v60, %v148_v59  ;;  %v153_v63 = vld [vmem:[#allocation10 + $0x100] sm:$0xff]  ;;  %v211_v5 = vld [vmem:[#allocation10 + $0x2d0] sm:$0xff]  ;;  %v160_v6 = vld [vmem:[#allocation10 + $0x138] sm:$0xff] }
  0x78   : > { %v205_v4 = vld [vmem:[#allocation10 + $0x2a0] sm:$0xff]  ;;  %v218_v8 = vld [vmem:[#allocation10 + $0x308] sm:$0xff]  ;;  %v224_v9 = vld [vmem:[#allocation10 + $0x338] sm:$0xff]  ;;  %v796_v10 = vpack.c.bf16 %v153_v63, %v147_v62  ;;  %s108_s21 = sadd.s32 %s107_s20, %s106_s19 }
  0x79   : > { %737 = vmatpush1.bf16.msra.mxu0 %v736_v28  ;;  %v166_v11 = vld [vmem:[#allocation10 + $0x168] sm:$0xff]  ;;  %v159_v13 = vld [vmem:[#allocation10 + $0x130] sm:$0xff]  ;;  %v165_v14 = vld [vmem:[#allocation10 + $0x160] sm:$0xff]  ;;  %v752_v19 = vpack.c.bf16 %v211_v5, %v205_v4  ;;  %v754_v20 = vpack.c.bf16 %v224_v9, %v218_v8  ;;  %s714_s24 = sshll.u32 %s108_s21, 4 }
  0x7a   : > { %739 = vmatprep.subr.bf16.mxu0 %v738_v29  ;;  %793 = vmatpush1.bf16.msra.mxu1 %v792_v58  ;;  %v798_v12 = vpack.c.bf16 %v166_v11, %v160_v6  ;;  %v1259_v15 = vld [vmem:[#allocation3] sm:$0x3]  ;;  %v178_v18 = vld [vmem:[#allocation10 + $0x1c8] sm:$0xff]  ;;  %v217_v21 = vld [vmem:[#allocation10 + $0x300] sm:$0xff]  ;;  %v800_v24 = vpack.c.bf16 %v165_v14, %v159_v13  ;;  %s1291_s27 = scalar_lea.hbm %s1356_s1, %s714_s24 }
  0x7b   : > { %795 = vmatprep.subr.bf16.mxu1 %v794_v61  ;;  %v1264_v16 = vrot.slane %v1259_v15, %v321_v0  ;;  %v172_v17 = vld [vmem:[#allocation10 + $0x198] sm:$0xff]  ;;  %v223_v22 = vld [vmem:[#allocation10 + $0x330] sm:$0xff]  ;;  %v230_v23 = vld [vmem:[#allocation10 + $0x368] sm:$0xff]  ;;  %s1052_s29 = scalar_lea.hbm %s1291_s27, 96  ;;  %p1057_p1 = scmp.lt.u32.totalorder %s1291_s27, %s1356_s1 }
  0x7c   : > { %v236_v25 = vld [vmem:[#allocation10 + $0x398] sm:$0xff]  ;;  %v802_v26 = vpack.c.bf16 %v178_v18, %v172_v17  ;;  %v171_v27 = vld [vmem:[#allocation10 + $0x190] sm:$0xff]  ;;  %v177_v28 = vld [vmem:[#allocation10 + $0x1c0] sm:$0xff]  ;;  %v756_v31 = vpack.c.bf16 %v223_v22, %v217_v21  ;;  %p1053_p12 = scmp.ne.s32.totalorder %s1291_s27, %s1052_s29  ;;  %p1058_p2 = scmp.lt.u32.totalorder %s1030_s25, %s1052_s29 }
  0x7d   : > { %741 = vmatpush1.bf16.msra.mxu0 %v740_v34  ;;  %420 = vmatprep.mubr.f32.mxu0 %v1264_v16  ;;  %v184_v29 = vld [vmem:[#allocation10 + $0x1f8] sm:$0xff]  ;;  %v190_v30 = vld [vmem:[#allocation10 + $0x228] sm:$0xff]  ;;  %v758_v32 = vpack.c.bf16 %v236_v25, %v230_v23  ;;  %v229_v33 = vld [vmem:[#allocation10 + $0x360] sm:$0xff]  ;;  %v804_v36 = vpack.c.bf16 %v177_v28, %v171_v27  ;;  %p1060_p4 = scmp.lt.u32.totalorder %s1052_s29, %s1291_s27 }
  0x7e   : > { %743 = vmatprep.subr.bf16.mxu0 %v742_v37  ;;  %797 = vmatpush1.bf16.msra.mxu1 %v796_v10  ;;  %v235_v34 = vld [vmem:[#allocation10 + $0x390] sm:$0xff]  ;;  %v242_v35 = vld [vmem:[#allocation10 + $0x3c8] sm:$0xff]  ;;  %v248_v37 = vld [vmem:[#allocation10 + $0x3f8] sm:$0xff]  ;;  %v806_v38 = vpack.c.bf16 %v190_v30, %v184_v29  ;;  %p1054_p13 = pnand %p1053_p12, %p918_p11  ;;  %p1059_p3 = por %p1058_p2, %p1057_p1 }
  0x7f   : > { %799 = vmatprep.subr.bf16.mxu1 %v798_v12  ;;  %491 = vmatprep.mubr.f32.mxu1 %v1264_v16  ;;  %v183_v39 = vld [vmem:[#allocation10 + $0x1f0] sm:$0xff]  ;;  %v189_v40 = vld [vmem:[#allocation10 + $0x220] sm:$0xff]  ;;  %v196_v41 = vld [vmem:[#allocation10 + $0x258] sm:$0xff]  ;;  %v760_v43 = vpack.c.bf16 %v235_v34, %v229_v33  ;;  %v762_v44 = vpack.c.bf16 %v248_v37, %v242_v35 }
  0x80   : > { %v202_v42 = vld [vmem:[#allocation10 + $0x288] sm:$0xff]  ;;  %v241_v45 = vld [vmem:[#allocation10 + $0x3c0] sm:$0xff]  ;;  %v247_v46 = vld [vmem:[#allocation10 + $0x3f0] sm:$0xff]  ;;  %p1055_p0 = pneg %p1054_p13  ;;  %p1061_p5 = por %p1060_p4, %p1059_p3 }
  0x81   : > { %745 = vmatpush1.bf16.msra.mxu0 %v744_v49  ;;  %v254_v47 = vld [vmem:[#allocation10 + $0x428] sm:$0xff]  ;;  %v808_v49 = vpack.c.bf16 %v189_v40, %v183_v39  ;;  %v260_v50 = vld [vmem:[#allocation10 + $0x458] sm:$0xff]  ;;  %v810_v51 = vpack.c.bf16 %v202_v42, %v196_v41  ;;  %v195_v52 = vld [vmem:[#allocation10 + $0x250] sm:$0xff]  ;;  %v764_v56 = vpack.c.bf16 %v247_v46, %v241_v45 }
  0x82   : > { %747 = vmatprep.subr.bf16.mxu0 %v746_v53  ;;  %801 = vmatpush1.bf16.msra.mxu1 %v800_v24  ;;  %v201_v53 = vld [vmem:[#allocation10 + $0x280] sm:$0xff]  ;;  %v208_v54 = vld [vmem:[#allocation10 + $0x2b8] sm:$0xff]  ;;  %v214_v55 = vld [vmem:[#allocation10 + $0x2e8] sm:$0xff]  ;;  %v766_v57 = vpack.c.bf16 %v260_v50, %v254_v47  ;;  %p1062_p6 = pnand %p1061_p5, %p1055_p0 }
  0x83   : > { %803 = vmatprep.subr.bf16.mxu1 %v802_v26  ;;  %v253_v58 = vld [vmem:[#allocation10 + $0x420] sm:$0xff]  ;;  %v259_v59 = vld [vmem:[#allocation10 + $0x450] sm:$0xff]  ;;  %v266_v60 = vld [vmem:[#allocation10 + $0x488] sm:$0xff]  ;;  %v812_v61 = vpack.c.bf16 %v201_v53, %v195_v52  ;;  %v814_v63 = vpack.c.bf16 %v214_v55, %v208_v54 }
  0x84   : > { %v272_v62 = vld [vmem:[#allocation10 + $0x4b8] sm:$0xff]  ;;  %v213_v4 = vld [vmem:[#allocation10 + $0x2e0] sm:$0xff]  ;;  %v226_v6 = vld [vmem:[#allocation10 + $0x348] sm:$0xff] }
  0x85   : > { %749 = vmatpush1.bf16.msra.mxu0 %v748_v3  ;;  %v207_v3 = vld [vmem:[#allocation10 + $0x2b0] sm:$0xff]  ;;  %v220_v5 = vld [vmem:[#allocation10 + $0x318] sm:$0xff]  ;;  %v770_v8 = vpack.c.bf16 %v272_v62, %v266_v60  ;;  %v265_v9 = vld [vmem:[#allocation10 + $0x480] sm:$0xff] }
  0x86   : > { %751 = vmatprep.subr.bf16.mxu0 %v750_v7  ;;  %805 = vmatpush1.bf16.msra.mxu1 %v804_v36  ;;  %v768_v7 = vpack.c.bf16 %v259_v59, %v253_v58  ;;  %v271_v10 = vld [vmem:[#allocation10 + $0x4b0] sm:$0xff]  ;;  %v278_v11 = vld [vmem:[#allocation10 + $0x4e8] sm:$0xff]  ;;  %v816_v12 = vpack.c.bf16 %v213_v4, %v207_v3  ;;  %v284_v13 = vld [vmem:[#allocation10 + $0x518] sm:$0xff]  ;;  %v818_v14 = vpack.c.bf16 %v226_v6, %v220_v5 }
  0x87   : > { %807 = vmatprep.subr.bf16.mxu1 %v806_v38  ;;  %v219_v17 = vld [vmem:[#allocation10 + $0x310] sm:$0xff]  ;;  %v225_v18 = vld [vmem:[#allocation10 + $0x340] sm:$0xff]  ;;  %v772_v21 = vpack.c.bf16 %v271_v10, %v265_v9  ;;  %v774_v22 = vpack.c.bf16 %v284_v13, %v278_v11  ;;  %v290_v25 = vld [vmem:[#allocation10 + $0x548] sm:$0xff] }
  0x88   : > { %v277_v23 = vld [vmem:[#allocation10 + $0x4e0] sm:$0xff]  ;;  %v283_v24 = vld [vmem:[#allocation10 + $0x510] sm:$0xff]  ;;  %v820_v26 = vpack.c.bf16 %v225_v18, %v219_v17  ;;  %v296_v27 = vld [vmem:[#allocation10 + $0x578] sm:$0xff] }
  0x89   : > { %753 = vmatpush1.bf16.msra.mxu0 %v752_v19  ;;  %v232_v19 = vld [vmem:[#allocation10 + $0x378] sm:$0xff]  ;;  %v231_v29 = vld [vmem:[#allocation10 + $0x370] sm:$0xff]  ;;  %v237_v30 = vld [vmem:[#allocation10 + $0x3a0] sm:$0xff]  ;;  %v776_v33 = vpack.c.bf16 %v283_v24, %v277_v23  ;;  %v778_v34 = vpack.c.bf16 %v296_v27, %v290_v25 }
  0x8a   : > { %755 = vmatprep.subr.bf16.mxu0 %v754_v20  ;;  %809 = vmatpush1.bf16.msra.mxu1 %v808_v49  ;;  %v238_v20 = vld [vmem:[#allocation10 + $0x3a8] sm:$0xff]  ;;  %v289_v35 = vld [vmem:[#allocation10 + $0x540] sm:$0xff]  ;;  %v295_v36 = vld [vmem:[#allocation10 + $0x570] sm:$0xff]  ;;  %v824_v38 = vpack.c.bf16 %v237_v30, %v231_v29 }
  0x8b   : > { %811 = vmatprep.subr.bf16.mxu1 %v810_v51  ;;  %v822_v28 = vpack.c.bf16 %v238_v20, %v232_v19  ;;  %v302_v37 = vld [vmem:[#allocation10 + $0x5a8] sm:$0xff]  ;;  %v308_v39 = vld [vmem:[#allocation10 + $0x5d8] sm:$0xff]  ;;  %v243_v41 = vld [vmem:[#allocation10 + $0x3d0] sm:$0xff]  ;;  %v780_v45 = vpack.c.bf16 %v295_v36, %v289_v35 }
  0x8c   : > { %v249_v42 = vld [vmem:[#allocation10 + $0x400] sm:$0xff]  ;;  %v782_v46 = vpack.c.bf16 %v308_v39, %v302_v37  ;;  %v307_v49 = vld [vmem:[#allocation10 + $0x5d0] sm:$0xff]  ;;  %v126_v50 = vld [vmem:[#allocation10 + $0x28] sm:$0xff] }
  0x8d   : > { %757 = vmatpush1.bf16.msra.mxu0 %v756_v31  ;;  %v244_v31 = vld [vmem:[#allocation10 + $0x3d8] sm:$0xff]  ;;  %v301_v47 = vld [vmem:[#allocation10 + $0x5a0] sm:$0xff]  ;;  %v828_v51 = vpack.c.bf16 %v249_v42, %v243_v41  ;;  %v255_v54 = vld [vmem:[#allocation10 + $0x430] sm:$0xff] }
  0x8e   : > { %759 = vmatprep.subr.bf16.mxu0 %v758_v32  ;;  %813 = vmatpush1.bf16.msra.mxu1 %v812_v61  ;;  %v250_v32 = vld [vmem:[#allocation10 + $0x408] sm:$0xff]  ;;  %v132_v52 = vld [vmem:[#allocation10 + $0x58] sm:$0xff]  ;;  %v261_v55 = vld [vmem:[#allocation10 + $0x460] sm:$0xff]  ;;  %v784_v59 = vpack.c.bf16 %v307_v49, %v301_v47 }
  0x8f   : > { %815 = vmatprep.subr.bf16.mxu1 %v814_v63  ;;  %v826_v40 = vpack.c.bf16 %v250_v32, %v244_v31  ;;  %v274_v58 = vld [vmem:[#allocation10 + $0x4c8] sm:$0xff]  ;;  %v850_v60 = vpack.c.bf16 %v132_v52, %v126_v50  ;;  %v125_v61 = vld [vmem:[#allocation10 + $0x20] sm:$0xff]  ;;  %v131_v62 = vld [vmem:[#allocation10 + $0x50] sm:$0xff]  ;;  %v832_v3 = vpack.c.bf16 %v261_v55, %v255_v54 }
  0x90   : > { %v138_v63 = vld [vmem:[#allocation10 + $0x88] sm:$0xff]  ;;  %v144_v4 = vld [vmem:[#allocation10 + $0xb8] sm:$0xff]  ;;  %v267_v6 = vld [vmem:[#allocation10 + $0x490] sm:$0xff]  ;;  %v852_v11 = vpack.c.bf16 %v131_v62, %v125_v61 }
  0x91   : > { %761 = vmatpush1.bf16.msra.mxu0 %v760_v43  ;;  %v256_v43 = vld [vmem:[#allocation10 + $0x438] sm:$0xff]  ;;  %v286_v10 = vld [vmem:[#allocation10 + $0x528] sm:$0xff]  ;;  %v137_v13 = vld [vmem:[#allocation10 + $0x80] sm:$0xff] }
  0x92   : > { %763 = vmatprep.subr.bf16.mxu0 %v762_v44  ;;  %817 = vmatpush1.bf16.msra.mxu1 %v816_v12  ;;  %v262_v44 = vld [vmem:[#allocation10 + $0x468] sm:$0xff]  ;;  %v280_v9 = vld [vmem:[#allocation10 + $0x4f8] sm:$0xff]  ;;  %v854_v12 = vpack.c.bf16 %v144_v4, %v138_v63  ;;  %v149_v27 = vld [vmem:[#allocation10 + $0xe0] sm:$0xff] }
  0x93   : > { %819 = vmatprep.subr.bf16.mxu1 %v818_v14  ;;  %v830_v53 = vpack.c.bf16 %v262_v44, %v256_v43  ;;  %v143_v14 = vld [vmem:[#allocation10 + $0xb0] sm:$0xff]  ;;  %v150_v17 = vld [vmem:[#allocation10 + $0xe8] sm:$0xff]  ;;  %v156_v19 = vld [vmem:[#allocation10 + $0x118] sm:$0xff]  ;;  %v838_v20 = vpack.c.bf16 %v286_v10, %v280_v9 }
  0x94   : > { %v292_v23 = vld [vmem:[#allocation10 + $0x558] sm:$0xff]  ;;  %v298_v24 = vld [vmem:[#allocation10 + $0x588] sm:$0xff]  ;;  %v856_v25 = vpack.c.bf16 %v143_v14, %v137_v13  ;;  %v161_v39 = vld [vmem:[#allocation10 + $0x140] sm:$0xff] }
  0x95   : > { %765 = vmatpush1.bf16.msra.mxu0 %v764_v56  ;;  %v317_v56 = vsub.s32 0, %v1256_v48  ;;  %v162_v29 = vld [vmem:[#allocation10 + $0x148] sm:$0xff]  ;;  %v168_v31 = vld [vmem:[#allocation10 + $0x178] sm:$0xff]  ;;  %v842_v32 = vpack.c.bf16 %v298_v24, %v292_v23  ;;  %v303_v44 = vld [vmem:[#allocation10 + $0x5b0] sm:$0xff] }
  0x96   : > { %767 = vmatprep.subr.bf16.mxu0 %v766_v57  ;;  %821 = vmatpush1.bf16.msra.mxu1 %v820_v26  ;;  %v268_v57 = vld [vmem:[#allocation10 + $0x498] sm:$0xff]  ;;  %v858_v26 = vpack.c.bf16 %v156_v19, %v150_v17  ;;  %v310_v36 = vld [vmem:[#allocation10 + $0x5e8] sm:$0xff]  ;;  %v173_v49 = vld [vmem:[#allocation10 + $0x1a0] sm:$0xff] }
  0x97   : > { %823 = vmatprep.subr.bf16.mxu1 %v822_v28  ;;  %v834_v5 = vpack.c.bf16 %v274_v58, %v268_v57  ;;  %v155_v28 = vld [vmem:[#allocation10 + $0x110] sm:$0xff]  ;;  %v304_v35 = vld [vmem:[#allocation10 + $0x5b8] sm:$0xff]  ;;  %v186_v52 = vld [vmem:[#allocation10 + $0x208] sm:$0xff] }
  0x98   : > { %v860_v37 = vpack.c.bf16 %v155_v28, %v149_v27  ;;  %v180_v42 = vld [vmem:[#allocation10 + $0x1d8] sm:$0xff]  ;;  %v846_v43 = vpack.c.bf16 %v310_v36, %v304_v35  ;;  %v179_v50 = vld [vmem:[#allocation10 + $0x1d0] sm:$0xff]  ;;  %v185_v57 = vld [vmem:[#allocation10 + $0x200] sm:$0xff] }
  0x99   : > { %769 = vmatpush1.bf16.msra.mxu0 %v768_v7  ;;  %v273_v7 = vld [vmem:[#allocation10 + $0x4c0] sm:$0xff]  ;;  %v868_v54 = vpack.c.bf16 %v179_v50, %v173_v49  ;;  %v191_v58 = vld [vmem:[#allocation10 + $0x230] sm:$0xff]  ;;  %v210_v4 = vld [vmem:[#allocation10 + $0x2c8] sm:$0xff] }
  0x9a   : > { %771 = vmatprep.subr.bf16.mxu0 %v770_v8  ;;  %825 = vmatpush1.bf16.msra.mxu1 %v824_v38  ;;  %v1272_v8 = vrot.slane %v1259_v15, %v317_v56  ;;  %v836_v18 = vpack.c.bf16 %v273_v7, %v267_v6  ;;  %v862_v38 = vpack.c.bf16 %v168_v31, %v162_v29  ;;  %v197_v63 = vld [vmem:[#allocation10 + $0x260] sm:$0xff]  ;;  %v215_v10 = vld [vmem:[#allocation10 + $0x2f0] sm:$0xff]  ;;  %v234_v19 = vld [vmem:[#allocation10 + $0x388] sm:$0xff] }
  0x9b   : > { %827 = vmatprep.subr.bf16.mxu1 %v826_v40  ;;  %v174_v40 = vld [vmem:[#allocation10 + $0x1a8] sm:$0xff]  ;;  %v872_v61 = vpack.c.bf16 %v191_v58, %v185_v57  ;;  %v209_v9 = vld [vmem:[#allocation10 + $0x2c0] sm:$0xff]  ;;  %v239_v24 = vld [vmem:[#allocation10 + $0x3b0] sm:$0xff] }
  0x9c   : > { %v866_v47 = vpack.c.bf16 %v180_v42, %v174_v40  ;;  %v880_v13 = vpack.c.bf16 %v215_v10, %v209_v9  ;;  %v221_v17 = vld [vmem:[#allocation10 + $0x320] sm:$0xff]  ;;  %v258_v31 = vld [vmem:[#allocation10 + $0x448] sm:$0xff]  ;;  %v263_v36 = vld [vmem:[#allocation10 + $0x470] sm:$0xff] }
  0x9d   : > { %773 = vmatpush1.bf16.msra.mxu0 %v772_v21  ;;  %v279_v21 = vld [vmem:[#allocation10 + $0x4f0] sm:$0xff]  ;;  %v233_v23 = vld [vmem:[#allocation10 + $0x380] sm:$0xff]  ;;  %v282_v42 = vld [vmem:[#allocation10 + $0x508] sm:$0xff] }
  0x9e   : > { %775 = vmatprep.subr.bf16.mxu0 %v774_v22  ;;  %829 = vmatpush1.bf16.msra.mxu1 %v828_v51  ;;  %v285_v22 = vld [vmem:[#allocation10 + $0x520] sm:$0xff]  ;;  %v888_v27 = vpack.c.bf16 %v239_v24, %v233_v23  ;;  %v294_v49 = vld [vmem:[#allocation10 + $0x568] sm:$0xff]  ;;  %v300_v50 = vld [vmem:[#allocation10 + $0x598] sm:$0xff] }
  0x9f   : > { %831 = vmatprep.subr.bf16.mxu1 %v830_v53  ;;  %v840_v30 = vpack.c.bf16 %v285_v22, %v279_v21  ;;  %v192_v53 = vld [vmem:[#allocation10 + $0x238] sm:$0xff]  ;;  %v245_v29 = vld [vmem:[#allocation10 + $0x3e0] sm:$0xff] }
  0xa0   : > { %v870_v55 = vpack.c.bf16 %v192_v53, %v186_v52  ;;  %v257_v35 = vld [vmem:[#allocation10 + $0x440] sm:$0xff]  ;;  %v906_v52 = vpack.c.bf16 %v300_v50, %v294_v49  ;;  %v312_v57 = vld [vmem:[#allocation10 + $0x5f8] sm:$0xff] }
  0xa1   : > { %777 = vmatpush1.bf16.msra.mxu0 %v776_v33  ;;  %v291_v33 = vld [vmem:[#allocation10 + $0x550] sm:$0xff]  ;;  %v269_v40 = vld [vmem:[#allocation10 + $0x4a0] sm:$0xff] }
  0xa2   : > { %779 = vmatprep.subr.bf16.mxu0 %v778_v34  ;;  %833 = vmatpush1.bf16.msra.mxu1 %v832_v3  ;;  %v297_v34 = vld [vmem:[#allocation10 + $0x580] sm:$0xff]  ;;  %v203_v3 = vld [vmem:[#allocation10 + $0x290] sm:$0xff] }
  0xa3   : > { %835 = vmatprep.subr.bf16.mxu1 %v834_v5  ;;  %v844_v41 = vpack.c.bf16 %v297_v34, %v291_v33  ;;  %v216_v5 = vld [vmem:[#allocation10 + $0x2f8] sm:$0xff]  ;;  %v876_v6 = vpack.c.bf16 %v203_v3, %v197_v63  ;;  %v293_v53 = vld [vmem:[#allocation10 + $0x560] sm:$0xff] }
  0xa4   : > { %v878_v7 = vpack.c.bf16 %v216_v5, %v210_v4 }
  0xa5   : > { %781 = vmatpush1.bf16.msra.mxu0 %v780_v45  ;;  %v309_v45 = vld [vmem:[#allocation10 + $0x5e0] sm:$0xff] }
  0xa6   : > { %783 = vmatprep.subr.bf16.mxu0 %v782_v46  ;;  %837 = vmatpush1.bf16.msra.mxu1 %v836_v18  ;;  %v848_v51 = vpack.c.bf16 %v309_v45, %v303_v44  ;;  %v227_v18 = vld [vmem:[#allocation10 + $0x350] sm:$0xff] }
  0xa7   : > { %839 = vmatprep.subr.bf16.mxu1 %v838_v20  ;;  %v240_v20 = vld [vmem:[#allocation10 + $0x3b8] sm:$0xff]  ;;  %v884_v21 = vpack.c.bf16 %v227_v18, %v221_v17 }
  0xa8   : > { %v886_v22 = vpack.c.bf16 %v240_v20, %v234_v19 }
  0xa9   : > { %785 = vmatpush1.bf16.msra.mxu0 %v784_v59  ;;  %v198_v59 = vld [vmem:[#allocation10 + $0x268] sm:$0xff] }
  0xaa   : > { %851 = vmatprep.subr.bf16.mxu0 %v850_v60  ;;  %841 = vmatpush1.bf16.msra.mxu1 %v840_v30  ;;  %v204_v60 = vld [vmem:[#allocation10 + $0x298] sm:$0xff]  ;;  %v251_v30 = vld [vmem:[#allocation10 + $0x410] sm:$0xff] }
  0xab   : > { %843 = vmatprep.subr.bf16.mxu1 %v842_v32  ;;  %v874_v62 = vpack.c.bf16 %v204_v60, %v198_v59  ;;  %v264_v32 = vld [vmem:[#allocation10 + $0x478] sm:$0xff]  ;;  %v892_v33 = vpack.c.bf16 %v251_v30, %v245_v29  ;;  %v305_v60 = vld [vmem:[#allocation10 + $0x5c0] sm:$0xff] }
  0xac   : > { %421 = vmatmul.mubr.f32.vlgmr.msra.gmra.mrb[0].mxu0 %v1272_v8  ;;  %v894_v34 = vpack.c.bf16 %v264_v32, %v258_v31 }
  0xad   : > { %853 = vmatpush1.bf16.msra.mxu0 %v852_v11  ;;  %562 = vmatprep.mubr.f32.mxu0 %v1264_v16  ;;  %v167_v16 = vld [vmem:[#allocation10 + $0x170] sm:$0xff]  ;;  %v222_v11 = vld [vmem:[#allocation10 + $0x328] sm:$0xff] }
  0xae   : > { %855 = vmatprep.subr.bf16.mxu0 %v854_v12  ;;  %v864_v46 = vpack.c.bf16 %v167_v16, %v161_v39  ;;  %845 = vmatpush1.bf16.msra.mxu1 %v844_v41  ;;  %v228_v12 = vld [vmem:[#allocation10 + $0x358] sm:$0xff]  ;;  %v896_v39 = vpack.c.bf16 %v263_v36, %v257_v35  ;;  %v275_v41 = vld [vmem:[#allocation10 + $0x4d0] sm:$0xff] }
  0xaf   : > { %847 = vmatprep.subr.bf16.mxu1 %v846_v43  ;;  %v882_v14 = vpack.c.bf16 %v228_v12, %v222_v11  ;;  %v288_v43 = vld [vmem:[#allocation10 + $0x538] sm:$0xff]  ;;  %v900_v44 = vpack.c.bf16 %v275_v41, %v269_v40 }
  0xb0   : > { %v902_v45 = vpack.c.bf16 %v288_v43, %v282_v42 }
  0xb1   : > { %857 = vmatpush1.bf16.msra.mxu0 %v856_v25  ;;  %v246_v25 = vld [vmem:[#allocation10 + $0x3e8] sm:$0xff] }
  0xb2   : > { %859 = vmatprep.subr.bf16.mxu0 %v858_v26  ;;  %849 = vmatpush1.bf16.msra.mxu1 %v848_v51  ;;  %v252_v26 = vld [vmem:[#allocation10 + $0x418] sm:$0xff] }
  0xb3   : > { %v890_v28 = vpack.c.bf16 %v252_v26, %v246_v25 }
  0xb5   : > { %861 = vmatpush1.bf16.msra.mxu0 %v860_v37  ;;  %492 = vmatmul.mubr.f32.vlgmr.msra.gmra.mrb[0].mxu1 %v1272_v8  ;;  %v270_v37 = vld [vmem:[#allocation10 + $0x4a8] sm:$0xff] }
  0xb6   : > { %863 = vmatprep.subr.bf16.mxu0 %v862_v38  ;;  %v276_v38 = vld [vmem:[#allocation10 + $0x4d8] sm:$0xff] }
  0xb7   : > { %v898_v16 = vpack.c.bf16 %v276_v38, %v270_v37 }
  0xb9   : > { %865 = vmatpush1.bf16.msra.mxu0 %v864_v46  ;;  %v281_v46 = vld [vmem:[#allocation10 + $0x500] sm:$0xff] }
  0xba   : > { %867 = vmatprep.subr.bf16.mxu0 %v866_v47  ;;  %v287_v47 = vld [vmem:[#allocation10 + $0x530] sm:$0xff] }
  0xbb   : > { %v904_v51 = vpack.c.bf16 %v287_v47, %v281_v46 }
  0xbd   : > { %869 = vmatpush1.bf16.msra.mxu0 %v868_v54  ;;  %v299_v54 = vld [vmem:[#allocation10 + $0x590] sm:$0xff] }
  0xbe   : > { %871 = vmatprep.subr.bf16.mxu0 %v870_v55  ;;  %v306_v55 = vld [vmem:[#allocation10 + $0x5c8] sm:$0xff]  ;;  %v908_v58 = vpack.c.bf16 %v299_v54, %v293_v53 }
  0xbf   : > { %v910_v59 = vpack.c.bf16 %v312_v57, %v306_v55 }
  0xc1   : > { %873 = vmatpush1.bf16.msra.mxu0 %v872_v61  ;;  %v311_v61 = vld [vmem:[#allocation10 + $0x5f0] sm:$0xff] }
  0xc2   : > { %875 = vmatprep.subr.bf16.mxu0 %v874_v62  ;;  %v912_v62 = vpack.c.bf16 %v311_v61, %v305_v60 }
  0xc5   : > { %877 = vmatpush1.bf16.msra.mxu0 %v876_v6 }
  0xc6   : > { %879 = vmatprep.subr.bf16.mxu0 %v878_v7 }
  0xc9   : > { %881 = vmatpush1.bf16.msra.mxu0 %v880_v13 }
  0xca   : > { %883 = vmatprep.subr.bf16.mxu0 %v882_v14 }
  0xcd   : > { %885 = vmatpush1.bf16.msra.mxu0 %v884_v21 }
  0xce   : > { %887 = vmatprep.subr.bf16.mxu0 %v886_v22 }
  0xd1   : > { %889 = vmatpush1.bf16.msra.mxu0 %v888_v27 }
  0xd2   : > { %891 = vmatprep.subr.bf16.mxu0 %v890_v28 }
  0xd5   : > { %893 = vmatpush1.bf16.msra.mxu0 %v892_v33 }
  0xd6   : > { %895 = vmatprep.subr.bf16.mxu0 %v894_v34 }
  0xd9   : > { %897 = vmatpush1.bf16.msra.mxu0 %v896_v39 }
  0xda   : > { %899 = vmatprep.subr.bf16.mxu0 %v898_v16 }
  0xdd   : > { %901 = vmatpush1.bf16.msra.mxu0 %v900_v44 }
  0xde   : > { %903 = vmatprep.subr.bf16.mxu0 %v902_v45 }
  0xe1   : > { %905 = vmatpush1.bf16.msra.mxu0 %v904_v51 }
  0xe2   : > { %907 = vmatprep.subr.bf16.mxu0 %v906_v52 }
  0xe5   : > { %909 = vmatpush1.bf16.msra.mxu0 %v908_v58 }
  0xe6   : > { %911 = vmatprep.subr.bf16.mxu0 %v910_v59 }
  0xe9   : > { %913 = vmatpush1.bf16.msra.mxu0 %v912_v62 }
  0xec   : > { %563 = vmatmul.mubr.f32.vlgmr.msra.gmra.mrb[2].mxu0 %v1272_v8 }
  0xed   : > { %1065 = shalt.err (!%p1062_p6)  }
  0xee   : > { %s1066_s11 = scalar_lea.vmem %s1293_s23, 96  ;;  %p1073_p10 = scmp.lt.s32.totalorder %s1293_s23, %s1220_s4 }
  0xef   : > { %p1067_p7 = scmp.ne.s32.totalorder %s1293_s23, %s1066_s11  ;;  %p1074_p12 = scmp.lt.s32.totalorder %s1044_s30, %s1066_s11 }
  0xf1   : > { %p1068_p8 = pnand %p1067_p7, %p918_p11  ;;  %p1075_p13 = por %p1074_p12, %p1073_p10 }
  0xf3   : > { %p1069_p9 = pneg %p1068_p8 }
  0xf5   : > { %p1076_p1 = pnand %p1075_p13, %p1069_p9 }
  0xf7   : > { %1079 = shalt.err (!%p1076_p1)  }
  0xf8   : > { %s1130_s12 = smov 128   ;;  %s1131_s14 = smov 16   ;;  %v313_v8 = vld [vmem:[#allocation12] sm:$0x3f]  ;;  %v336_v10 = vsub.s32 2, %v1256_v48  ;;  %v340_v11 = vsub.s32 3, %v1256_v48 }
  0xf9   : > { %s1132_s15 = smov 1   ;;  %p713_p0 = scmp.ge.s32.totalorder %s1279_s13, 8  ;;  %v329_v63 = vrot.slane %v313_v8, %v317_v56  ;;  %v333_v3 = vrot.slane %v313_v8, %v321_v0  ;;  %v1133_v17 = vmov 1966171168   ;;  %v344_v34 = vsub.s32 4, %v1256_v48 }
  0xfa   : > { %917 = dma.hbm_to_vmem [thread:$0]  (%p918_p11), %s1291_s27, 96, %s1293_s23, %s113_s28, %s1130_s12, %s1131_s14, %s1132_s15  ;;  %v337_v12 = vrot.slane %v313_v8, %v336_v10  ;;  %v341_v13 = vrot.slane %v313_v8, %v340_v11  ;;  %v573_v18 = vunpack.c.l.s4 %v1133_v17  ;;  %v348_v35 = vsub.s32 5, %v1256_v48 }
  0xfb   : > { %v119_v25 = vld [vmem:[%s1252_s2] sm:$0x3f]  ;;  %v345_v37 = vrot.slane %v313_v8, %v344_v34  ;;  %s650_s2 = sshra.s32 %s1118_s9, 3  ;;  %s653_s16 = sand.u32 7, %s1118_s9 }
  0xfc   : > { %v574_v0 = vunpack.c.0.s8 %v573_v18  ;;  %v595_v29 = vrot.slane %v119_v25, 2  ;;  %v349_v38 = vrot.slane %v313_v8, %v348_v35  ;;  %v641_v46 = vrot.slane %v119_v25, 4  ;;  %s721_s3 = sshll.u32 %s650_s2, 4  ;;  %s1363_s9 = smov %s1279_s13 }
  0xfd   : > { %s656_s17 = sadd.s32 %s721_s3, %s653_s16  ;;  %s1134_s9 = smov (%p713_p0), [#allocation13]  }
  0xfe   : > { %v577_v22 = vsub.s32 %v574_v0, %v1256_v48  ;;  %s657_s18 = scalar_lea.vmem [#allocation13], %s656_s17  ;;  %s666_s19 = sshll.u32 (%p713_p0), %s1134_s9, 4  ;;  %s667_s19 = int_to_ptr.vmem [resolvable:$true] %s666_s19 }
  0xff   :  { %s1080_s20 = scalar_lea.vmem (%p713_p0), %s667_s19, 256  ;;  %p1085_p2 = scmp.lt.s32.totalorder (%p713_p0), %s667_s19, %s667_s19 }
 0x100   :  { %p1081_p11 = scmp.ne.s32.totalorder (%p713_p0), %s667_s19, %s1080_s20  ;;  %p1086_p3 = scmp.lt.s32.totalorder (%p713_p0), %s1080_s20, %s1080_s20 }
 0x102   :  { %p1087_p4 = por (%p713_p0), %p1086_p3, %p1085_p2 }
 0x104   :  { %p1088_p5 = pnand (%p713_p0), %p1087_p4, %p1081_p11 }
 0x17f   : > { %v422_v4 = vpop.f32.mrb[0].mxu0 }
 0x180   : > { %v423_v5 = vadd.f32 %v422_v4, %v329_v63  ;;  %v424_v6 = vpop.f32.mrb[1].mxu0 }
 0x181   : > { %v425_v7 = vadd.f32 %v424_v6, %v333_v3 }
 0x183   : > { %v571_v9 = vcombine.low %v423_v5, %v425_v7 }
 0x185   : > { %v578_v23 = vrot.slane %v571_v9, %v577_v22 }
 0x187   : > { %v585_v24 = vrot.slane %v578_v23, %v577_v22 }
 0x188   : > { %v493_v14 = vpop.f32.mrb[0].mxu1 }
 0x189   : > { %v494_v19 = vadd.f32 %v493_v14, %v337_v12  ;;  %v495_v56 = vpop.f32.mrb[1].mxu1  ;;  %v587_v26 = vadd.f32 %v585_v24, %v119_v25 }
 0x18a   : > { %v496_v20 = vadd.f32 %v495_v56, %v341_v13 }
 0x18b   : > { %v715_v28 = vmul.f32 -1.442695, %v587_v26 }
 0x18c   : > { %v599_v21 = vcombine.low %v494_v19, %v496_v20 }
 0x18d   : > { %942 = vpow2.f32 %v715_v28 }
 0x18e   : > { %v606_v27 = vrot.slane %v599_v21, %v577_v22 }
 0x190   : > { %v613_v30 = vrot.slane %v606_v27, %v577_v22 }
 0x192   : > { %v615_v31 = vadd.f32 %v613_v30, %v595_v29 }
 0x194   : > { %v716_v32 = vmul.f32 -1.442695, %v615_v31 }
 0x196   : > { %944 = vpow2.f32 %v716_v32 }
 0x197   : > { %v943_v33 = vpop.eup %942 }
 0x198   : > { %v591_v36 = vadd.f32 1.0, %v943_v33 }
 0x19a   : > { %946 = vrcp.f32 %v591_v36 }
 0x1a0   : > { %v945_v16 = vpop.eup %944 }
 0x1a1   : > { %v619_v43 = vadd.f32 1.0, %v945_v16 }
 0x1a3   : > { %948 = vrcp.f32 %v619_v43 }
 0x1a4   : > { %v947_v49 = vpop.eup %946 }
 0x1ad   : > { %v949_v51 = vpop.eup %948 }
 0x1ae   : > { %v645_v52 = vsub.f32 1.0, %v949_v51  ;;  %v647_v54 = vmul.f32 %v949_v51, %v1259_v15 }
 0x1bf   : > { %v564_v39 = vpop.f32.mrb[2].mxu0 }
 0x1c0   : > { %v565_v40 = vadd.f32 %v564_v39, %v345_v37  ;;  %v566_v41 = vpop.f32.mrb[3].mxu0 }
 0x1c1   : > { %v567_v42 = vadd.f32 %v566_v41, %v349_v38 }
 0x1c3   : > { %v624_v44 = vcombine.low %v565_v40, %v567_v42 }
 0x1c5   : > { %v631_v45 = vrot.slane %v624_v44, %v577_v22 }
 0x1c7   : > { %v638_v47 = vrot.slane %v631_v45, %v577_v22 }
 0x1c9   : > { %v640_v50 = vmul.f32 %v947_v49, %v638_v47 }
 0x1cb   : > { %v643_v48 = vadd.f32 %v641_v46, %v640_v50 }
 0x1cd   : > { %950 = vtanh.f32 %v643_v48 }
 0x1d6   :  { %89 = sbr.rel (!%p713_p0) target bundleno = 100 (0x64), region = 71 }
 0x1d7   : > { %v951_v53 = vpop.eup %950 }
 0x1d8   : > { %v646_v55 = vmul.f32 %v951_v53, %v645_v52 }
 0x1da   : > { %v648_v57 = vadd.f32 %v647_v54, %v646_v55 }
 0x1dc   : > { %649 = vst.msk [vmem:[#allocation3] sm:$0x3] %vm1214_vm0, %v648_v57  ;;  %658 = vst.msk [vmem:[%s657_s18] ss:$8 sm:$0x3] %vm1214_vm0, %v648_v57 }
 0x1dd   :  { %1091 = shalt.err (!%p1088_p5)
}
 0x1de   :  { %s1092_s23 = scalar_lea.hbm %s1360_s5, 256 }
 0x1df   :  { %p1093_p6 = scmp.ne.s32.totalorder %s1360_s5, %s1092_s23  ;;  %p1096_p7 = scmp.lt.u32.totalorder %s1092_s23, %s1360_s5 }
 0x1e1   :  { %p1098_p8 = pnand %p1096_p7, %p1093_p6 }
 0x1e3   :  { %1101 = shalt.err (!%p1098_p8)
}
 0x1e4   :  { %669 = dma.vmem_to_hbm [thread:$0]  %s667_s19, 256, %s1360_s5, [#allocation7]  }
 0x1e5   :  { %1114 = dma.done.wait [#allocation7], 256  }
 0x1e6   :  { %1115 = vsyncadd [#allocation7], 4294967040 }
 0x1e7   :  { %673 = vsyncpa [#allocation6], 1 }
 0x1e8   :  { %674 = vsyncpa [#allocation11], 1 }
 0x1e9   :  { %675 = vsyncpa [#allocation7], 1 }
 0x1ea   :  { %676 = vsyncpa [#allocation8], 1 }
 0x1eb   :  { %677 = vsyncmov [#allocation4] }
 0x1ee   :  { %s678_s25 = vpop.sfrf %677 }
 0x1ef   :  { %p719_p9 = scmp.ne.s32.totalorder %s678_s25, 0 }
 0x1f1   :  { %682 = shalt.err (%p719_p9)  }
 0x1f2   :  { %684 = vsyncmov [#allocation4 + $0x1] }
 0x1f5   :  { %s685_s30 = vpop.sfrf %684 }
 0x1f6   :  { %p720_p10 = scmp.ne.s32.totalorder %s685_s30, 0 }
 0x1f8   :  { %689 = shalt.err (%p720_p10)  }

</bundles_post_ra>
